<compile_context>
chip_gen: v5e
topology: v5e:2x2
jax: 0.10.0
libtpu: 0.0.40
codegen_flags: <defaults>
</compile_context>

<pallas_src>
import math

import jax
import jax.numpy as jnp
from jax.experimental import pallas as pl
from jax.experimental.pallas import tpu as pltpu


# ---------------------------------------------------------------------------
# Kernels
# ---------------------------------------------------------------------------
def _fc_kernel_acc_bias(x_ref, w_ref, b_ref, o_ref, acc_ref):
    """o = x @ w + b, K accumulated over grid axis 2 in f32."""
    k = pl.program_id(2)

    @pl.when(k == 0)
    def _():
        acc_ref[...] = jnp.zeros_like(acc_ref)

    acc_ref[...] += jnp.dot(
        x_ref[...], w_ref[...], preferred_element_type=jnp.float32
    )

    @pl.when(k == pl.num_programs(2) - 1)
    def _():
        # act = nn.Identity() -> no-op
        o_ref[...] = (acc_ref[...] + b_ref[...]).astype(o_ref.dtype)


def _fc_kernel_acc_nobias(x_ref, w_ref, o_ref, acc_ref):
    """o = x @ w, K accumulated over grid axis 2 in f32."""
    k = pl.program_id(2)

    @pl.when(k == 0)
    def _():
        acc_ref[...] = jnp.zeros_like(acc_ref)

    acc_ref[...] += jnp.dot(
        x_ref[...], w_ref[...], preferred_element_type=jnp.float32
    )

    @pl.when(k == pl.num_programs(2) - 1)
    def _():
        o_ref[...] = acc_ref[...].astype(o_ref.dtype)


def _fc_kernel_1k_bias(x_ref, w_ref, b_ref, o_ref):
    """Single-K-step fast path: no accumulator scratch, no epilogue."""
    o_ref[...] = (
        jnp.dot(x_ref[...], w_ref[...], preferred_element_type=jnp.float32)
        + b_ref[...]
    ).astype(o_ref.dtype)


def _fc_kernel_1k_nobias(x_ref, w_ref, o_ref):
    o_ref[...] = jnp.dot(
        x_ref[...], w_ref[...], preferred_element_type=jnp.float32
    ).astype(o_ref.dtype)


# ---------------------------------------------------------------------------
# Tiling helpers
# ---------------------------------------------------------------------------
def _round_up(x: int, m: int) -> int:
    return ((x + m - 1) // m) * m


def _cdiv(a: int, b: int) -> int:
    return (a + b - 1) // b


def _sublane(dtype) -> int:
    # Minimum sublane tile: 8 for 4-byte dtypes, 16 for bf16, 32 for int8.
    return max(8, 32 // jnp.dtype(dtype).itemsize)


def _pick_tile(dim: int, max_tile: int, align: int) -> int:
    """Largest aligned tile <= max_tile that keeps total padding small."""
    if dim <= max_tile:
        return _round_up(dim, align)
    chunks = _cdiv(dim, max_tile)
    return _round_up(_cdiv(dim, chunks), align)


def _vmem_budget() -> int:
    """~3/4 of physical VMEM: ~96 MiB on v5e/v6e (128 MiB), ~48 MiB on v7x."""
    try:
        cap = int(pltpu.get_tpu_info().vmem_capacity_bytes)
    except Exception:
        cap = 64 * 1024 * 1024  # conservative (v7x-sized) default
    return (cap * 3) // 4


def _footprint(tm, tn, tk, in_sz, out_sz, with_acc) -> int:
    # double-buffered inputs + double-buffered output (+ f32 acc scratch)
    f = 2 * (tm * tk + tk * tn) * in_sz + 2 * tm * tn * out_sz
    if with_acc:
        f += tm * tn * 4
    return f


# ---------------------------------------------------------------------------
# pallas_call builder
# ---------------------------------------------------------------------------
def _fc_matmul(x, wt, b2d, out_dtype, tm, tn, tk, vmem_limit):
    m_pad, k_pad = x.shape
    k_pad2, n_pad = wt.shape
    assert k_pad == k_pad2
    grid_m, grid_n, grid_k = m_pad // tm, n_pad // tn, k_pad // tk
    out_shape = jax.ShapeDtypeStruct((m_pad, n_pad), out_dtype)

    if grid_k == 1:
        # Single K step: no scratch, no init/finalize, 2-D parallel grid.
        cp = pltpu.CompilerParams(
            dimension_semantics=("parallel", "parallel"),
            vmem_limit_bytes=vmem_limit,
        )
        x_spec = pl.BlockSpec((tm, tk), lambda i, j: (i, 0))
        w_spec = pl.BlockSpec((tk, tn), lambda i, j: (0, j))
        o_spec = pl.BlockSpec((tm, tn), lambda i, j: (i, j))
        if b2d is not None:
            b_spec = pl.BlockSpec((1, tn), lambda i, j: (0, j))
            return pl.pallas_call(
                _fc_kernel_1k_bias,
                out_shape=out_shape,
                grid_spec=pltpu.PrefetchScalarGridSpec(
                    num_scalar_prefetch=0,
                    grid=(grid_m, grid_n),
                    in_specs=[x_spec, w_spec, b_spec],
                    out_specs=o_spec,
                ),
                compiler_params=cp,
            )(x, wt, b2d)
        return pl.pallas_call(
            _fc_kernel_1k_nobias,
            out_shape=out_shape,
            grid_spec=pltpu.PrefetchScalarGridSpec(
                num_scalar_prefetch=0,
                grid=(grid_m, grid_n),
                in_specs=[x_spec, w_spec],
                out_specs=o_spec,
            ),
            compiler_params=cp,
        )(x, wt)

    # Multi-K accumulation path.
    cp = pltpu.CompilerParams(
        dimension_semantics=("parallel", "parallel", "arbitrary"),
        vmem_limit_bytes=vmem_limit,
    )
    x_spec = pl.BlockSpec((tm, tk), lambda i, j, k: (i, k))
    w_spec = pl.BlockSpec((tk, tn), lambda i, j, k: (k, j))
    o_spec = pl.BlockSpec((tm, tn), lambda i, j, k: (i, j))
    scratch = [pltpu.VMEM((tm, tn), jnp.float32)]
    if b2d is not None:
        b_spec = pl.BlockSpec((1, tn), lambda i, j, k: (0, j))
        return pl.pallas_call(
            _fc_kernel_acc_bias,
            out_shape=out_shape,
            grid_spec=pltpu.PrefetchScalarGridSpec(
                num_scalar_prefetch=0,
                grid=(grid_m, grid_n, grid_k),
                in_specs=[x_spec, w_spec, b_spec],
                out_specs=o_spec,
                scratch_shapes=scratch,
            ),
            compiler_params=cp,
        )(x, wt, b2d)
    return pl.pallas_call(
        _fc_kernel_acc_nobias,
        out_shape=out_shape,
        grid_spec=pltpu.PrefetchScalarGridSpec(
            num_scalar_prefetch=0,
            grid=(grid_m, grid_n, grid_k),
            in_specs=[x_spec, w_spec],
            out_specs=o_spec,
            scratch_shapes=scratch,
        ),
        compiler_params=cp,
    )(x, wt)


# ---------------------------------------------------------------------------
# Module wrapper (weight prepared once, reused every forward)
# ---------------------------------------------------------------------------
class FullyConnectPallas:
    """FullyConnect forward with W^T transposed/padded once at init time."""

    def __init__(self, weight, bias=None, *, compute_dtype=None,
                 max_tn=512, max_tk=512):
        out_ft, in_ft = weight.shape
        self.in_ft, self.out_ft = in_ft, out_ft
        self.compute_dtype = jnp.dtype(compute_dtype or weight.dtype)

        self.tn = _pick_tile(out_ft, max_tn, 128)
        self.tk = _pick_tile(in_ft, max_tk, 128)
        self.n_pad = _round_up(out_ft, self.tn)
        self.k_pad = _round_up(in_ft, self.tk)

        wt = weight.T.astype(self.compute_dtype)          # [in_ft, out_ft]
        if (self.k_pad, self.n_pad) != (in_ft, out_ft):
            wt = jnp.pad(wt, ((0, self.k_pad - in_ft), (0, self.n_pad - out_ft)))
        self.wt = wt

        if bias is not None:
            b2d = bias.reshape(1, out_ft).astype(jnp.float32)
            if self.n_pad != out_ft:
                b2d = jnp.pad(b2d, ((0, 0), (0, self.n_pad - out_ft)))
            self.b2d = b2d
        else:
            self.b2d = None

    def __call__(self, emb, *, drop_prob=0.0, training=False, rng=None,
                 max_tm=512, use_pallas=None):
        n_rows, in_ft = emb.shape
        assert in_ft == self.in_ft, "emb feature dim must match weight"
        out_dtype = emb.dtype

        x = emb
        if training and drop_prob > 0.0:
            # TODO(synk): fuse dropout into the kernel with pltpu.prng_seed +
            # pltpu.prng_random_bits instead of a separate masked pass.
            if rng is None:
                raise ValueError("training-mode dropout requires an rng key")
            keep = jax.random.bernoulli(rng, 1.0 - drop_prob, x.shape)
            x = jnp.where(keep, x / (1.0 - drop_prob), 0.0).astype(out_dtype)

        if use_pallas is None:
            use_pallas = (2.0 * n_rows * in_ft * self.out_ft) >= 1e8
        if not use_pallas:
            # Latency-bound sizes: XLA's fused matmul wins. Keep numerics
            # consistent with the Pallas path (f32 accumulation).
            out = jnp.dot(x.astype(self.compute_dtype),
                          self.wt[:in_ft, :self.out_ft],
                          preferred_element_type=jnp.float32)
            if self.b2d is not None:
                out = out + self.b2d[0, :self.out_ft]
            return out.astype(out_dtype)

        sub = _sublane(self.compute_dtype)
        tm = _pick_tile(n_rows, max_tm, sub)
        m_pad = _round_up(n_rows, tm)
        grid_m, grid_n = m_pad // tm, self.n_pad // self.tn

        # v7x has 2 TensorCores: keep >= 2 blocks on the parallel axes.
        if grid_m * grid_n < 2 and n_rows > sub:
            tm = _round_up(_cdiv(n_rows, 2), sub)
            m_pad = _round_up(n_rows, tm)

        # Generation-aware VMEM cap (96 MiB v5e/v6e, 48 MiB v7x): shrink tm
        # if the double-buffered tile footprint would not fit.
        budget = _vmem_budget()
        in_sz = self.compute_dtype.itemsize
        out_sz = jnp.dtype(out_dtype).itemsize
        grid_k = self.k_pad // self.tk
        while (_footprint(tm, self.tn, self.tk, in_sz, out_sz, grid_k > 1)
               > budget and tm > sub):
            tm = _round_up(_cdiv(tm, 2), sub)
            m_pad = _round_up(n_rows, tm)

        x = x.astype(self.compute_dtype)
        if (m_pad, self.k_pad) != (n_rows, in_ft):
            x = jnp.pad(x, ((0, m_pad - n_rows), (0, self.k_pad - in_ft)))

        out_pad = _fc_matmul(x, self.wt, self.b2d, out_dtype,
                             tm, self.tn, self.tk, vmem_limit=budget)
        if out_pad.shape != (n_rows, self.out_ft):
            out_pad = out_pad[:n_rows, :self.out_ft]
        return out_pad


def fully_connect(emb, weight, bias=None, *, drop_prob=0.0, training=False,
                  rng=None, compute_dtype=None, use_pallas=None,
                  max_tm=512, max_tn=512, max_tk=512):
    """One-shot functional form. For repeated forwards, build
    FullyConnectPallas once so the weight transpose/pad is not re-done."""
    layer = FullyConnectPallas(weight, bias, compute_dtype=compute_dtype,
                               max_tn=max_tn, max_tk=max_tk)
    return layer(emb, drop_prob=drop_prob, training=training, rng=rng,
                 max_tm=max_tm, use_pallas=use_pallas)


def xavier_uniform(key, out_ft, in_ft, dtype=jnp.float32):
    # Matches torch.nn.init.xavier_uniform_ (gain=1) for [out_ft, in_ft].
    limit = math.sqrt(6.0 / (in_ft + out_ft))
    return jax.random.uniform(key, (out_ft, in_ft), dtype=dtype,
                              minval=-limit, maxval=limit)


# ---------------------------------------------------------------------------
# Demo / correctness check
# ---------------------------------------------------------------------------
if __name__ == "__main__":
    key = jax.random.PRNGKey(0)
    k1, k2, k3, k4 = jax.random.split(key, 4)

    # 1) Small non-aligned shape, isBias=True: single-K no-scratch fast path,
    #    padding, and the 2-block parallel M split.
    n, in_ft, out_ft = 96, 160, 80
    emb = jax.random.normal(k1, (n, in_ft), dtype=jnp.float32)
    weight = xavier_uniform(k2, out_ft, in_ft)          # [out_ft, in_ft]
    bias = jnp.zeros((out_ft,), dtype=jnp.float32)      # isBias=True -> zeros
    layer = FullyConnectPallas(weight, bias)            # W^T prepped once
    out = layer(emb, use_pallas=True)
    jax.block_until_ready(out)
    ref = emb @ weight.T + bias
    assert out.shape == (n, out_ft)
    assert jnp.allclose(out, ref, atol=1e-4, rtol=1e-5), "bias path mismatch"

    # 2) Multi-K accumulation path (small max_tk forces 3 K-steps), isBias=False.
    n2, in2, out2 = 64, 600, 200
    emb2 = jax.random.normal(k3, (n2, in2), dtype=jnp.float32)
    w2 = xavier_uniform(k4, out2, in2)
    layer2 = FullyConnectPallas(w2, None, max_tk=256)
    out2a = layer2(emb2, use_pallas=True)
    jax.block_until_ready(out2a)
    assert jnp.allclose(out2a, emb2 @ w2.T, atol=1e-4, rtol=1e-5), \
        "no-bias multi-K path mismatch"

    # 3) bf16 compute path (f32 accumulation, f32 output).
    layer_bf16 = FullyConnectPallas(weight, bias, compute_dtype=jnp.bfloat16)
    out_bf = layer_bf16(emb, use_pallas=True)
    jax.block_until_ready(out_bf)
    assert out_bf.dtype == emb.dtype
    assert jnp.allclose(out_bf, ref, atol=5e-2, rtol=5e-2), "bf16 path mismatch"

    # 4) Tiny problem: auto-dispatch falls back to plain XLA (same semantics).
    emb_s = jax.random.normal(k1, (8, 32), dtype=jnp.float32)
    w_s = xavier_uniform(k2, 16, 32)
    out_s = fully_connect(emb_s, w_s)
    jax.block_until_ready(out_s)
    assert jnp.allclose(out_s, emb_s @ w_s.T, atol=1e-5, rtol=1e-5), \
        "fallback mismatch"

    print("KERNEL_OK")
</pallas_src>

<mosaic_0001>
module attributes {stable_mosaic.version = 11 : i64} {
  func.func @_fc_kernel_1k_bias(%arg0: i32, %arg1: i32, %arg2: memref<48x256xf32, #tpu.memory_space<vmem>>, %arg3: memref<256x128xf32, #tpu.memory_space<vmem>>, %arg4: memref<1x128xf32, #tpu.memory_space<vmem>>, %arg5: memref<48x128xf32, #tpu.memory_space<vmem>>) attributes {dimension_semantics = [#tpu.dimension_semantics<parallel>, #tpu.dimension_semantics<parallel>], iteration_bounds = array<i64: 2, 1>, scalar_prefetch = 0 : i64, scratch_operands = 0 : i64, tpu.core_type = #tpu.core_type<tc>, window_params = [{transform_indices = @transform_0, window_bounds = array<i64: 48, 256>}, {transform_indices = @transform_1, window_bounds = array<i64: 256, 128>}, {transform_indices = @transform_2, window_bounds = array<i64: 1, 128>}, {transform_indices = @transform_3, window_bounds = array<i64: 48, 128>}]} {
    %c0 = arith.constant 0 : index
    %c0_0 = arith.constant 0 : index
    %0 = vector.load %arg2[%c0, %c0_0] : memref<48x256xf32, #tpu.memory_space<vmem>>, vector<48x256xf32>
    %c0_1 = arith.constant 0 : index
    %c0_2 = arith.constant 0 : index
    %1 = vector.load %arg3[%c0_1, %c0_2] : memref<256x128xf32, #tpu.memory_space<vmem>>, vector<256x128xf32>
    %cst = arith.constant dense<0.000000e+00> : vector<48x128xf32>
    %2 = tpu.matmul %0, %1, %cst {dimension_numbers = #tpu.dot_dimension_numbers<[1], [0], [0], [1], [0, 0, 1, 1], [], []>} : vector<48x256xf32>, vector<256x128xf32>, vector<48x128xf32> -> vector<48x128xf32>
    %c0_3 = arith.constant 0 : index
    %c0_4 = arith.constant 0 : index
    %3 = vector.load %arg4[%c0_3, %c0_4] : memref<1x128xf32, #tpu.memory_space<vmem>>, vector<1x128xf32>
    %4 = vector.broadcast %3 : vector<1x128xf32> to vector<48x128xf32>
    %5 = arith.addf %2, %4 : vector<48x128xf32>
    %c0_5 = arith.constant 0 : index
    %c0_6 = arith.constant 0 : index
    %6 = vector.load %arg5[%c0_5, %c0_6] : memref<48x128xf32, #tpu.memory_space<vmem>>, vector<48x128xf32>
    tpu.vector_store %arg5[%c0_5, %c0_6], %5 {strides = array<i32>} : memref<48x128xf32, #tpu.memory_space<vmem>>, vector<48x128xf32>,
    return
  }
  func.func @transform_0(%arg0: i32, %arg1: i32) -> (i32, i32) {
    %c0_i32 = arith.constant 0 : i32
    %c0_i32_0 = arith.constant 0 : i32
    return %arg0, %c0_i32 : i32, i32
  }
  func.func @transform_1(%arg0: i32, %arg1: i32) -> (i32, i32) {
    %c0_i32 = arith.constant 0 : i32
    %c0_i32_0 = arith.constant 0 : i32
    return %c0_i32, %arg1 : i32, i32
  }
  func.func @transform_2(%arg0: i32, %arg1: i32) -> (i32, i32) {
    %c0_i32 = arith.constant 0 : i32
    %c0_i32_0 = arith.constant 0 : i32
    return %c0_i32, %arg1 : i32, i32
  }
  func.func @transform_3(%arg0: i32, %arg1: i32) -> (i32, i32) {
    %c0_i32 = arith.constant 0 : i32
    return %arg0, %arg1 : i32, i32
  }
}

</mosaic_0001>

<bundles_post_ra>
// kernel: tpu_custom_call.1
= control target key start
LH: loop header
LB: loop body
LE: loop exit
PB: predicated region body
PF: predicated region fallthrough
CT: control target
= control target key end

     0   :  { %8 = vsyncpa [#allocation3], 0  ;;  %s962_s0 = inlined_call_operand.hbm [shape: f32[96,256], index: 0, kind: input, shape index: {}]   ;;  %s963_s1 = inlined_call_operand.hbm [shape: f32[256,128], index: 1, kind: input, shape index: {}]   ;;  %s964_s2 = inlined_call_operand.vmem [shape: f32[1,128], index: 2, kind: input, shape index: {}]   ;;  %s965_s3 = inlined_call_operand.hbm [shape: f32[96,128], index: 3, kind: output, shape index: {}]  }
   0x1   :  { %10 = vsyncpa [#allocation3 + $0x1], 0 }
   0x2   :  { %11 = vsyncpa [#allocation6], 0 }
   0x3   :  { %12 = vsyncpa [#allocation4], 0 }
   0x4   :  { %14 = vsyncpa [#allocation4 + $0x1], 0  ;;  %s801_s12 = smov 0   ;;  %s803_s13 = smov 0  }
   0x5   :  { %s805_s14 = smov 0   ;;  %s807_s15 = smov 0  }
   0x6   :  { %s809_s16 = smov 0   ;;  %s811_s17 = smov 0  }
   0x7 LB: > { %s494_s18 = sadd.s32 4294967295, %s772_s17   ;;  %s495_s19 = sadd.s32 4294967294, %s772_s17   ;;  %s772_s17 = sphi %s811_s17, %s20_s17   ;;  %s768_s16 = sphi %s809_s16, %s976_s16   ;;  %s764_s15 = sphi %s807_s15, %s975_s15   ;;  %s760_s14 = sphi %s805_s14, %s974_s14   ;;  %s756_s13 = sphi %s803_s13, %s973_s13   ;;  %s752_s12 = sphi %s801_s12, %s972_s12  }
   0x8   : > { %p52_p0 = scmp.ne.s32.totalorder %s756_s13, %s752_s12  ;;  %p835_p1 = scmp.eq.s32.totalorder %s494_s18, 0 }
   0x9   : > { %p839_p2 = scmp.eq.s32.totalorder %s494_s18, 1  ;;  %p136_p3 = scmp.eq.s32.totalorder %s495_s19, 1 }
   0xa   : > { %p845_p4 = por %p835_p1, %p52_p0  ;;  %p496_p5 = scmp.ge.s32.totalorder %s772_s17, 1 }
   0xb   : > { %p850_p6 = por %p136_p3, %p52_p0  ;;  %p143_p7 = scmp.lt.s32.totalorder %s772_s17, 3 }
   0xc   : > { %s156_s26 = sshll.u32 %s963_s1, 4  ;;  %s774_s28 = smov [#allocation5]   ;;  %s157_s26 = int_to_ptr.hbm [resolvable:$true] %s156_s26 }
   0xd   : > { %p858_p8 = pnand %p496_p5, %p143_p7  ;;  %s158_s29 = sshll.u32 %s774_s28, 4  ;;  %s159_s29 = int_to_ptr.vmem [resolvable:$true] %s158_s29 }
   0xe   : > { %p499_p11 = scmp.ge.s32.totalorder %s772_s17, 2  ;;  %s775_s30 = smov 128  }
   0xf   : > { %p554_p9 = pneg %p858_p8  ;;  %s776_s4 = smov 8  }
  0x10   : > { %s32_s5 = sadd.s32 1, %s768_s16  ;;  %s39_s6 = sadd.s32 1, %s760_s14 }
  0x11   : > { %p555_p10 = pnand %p554_p9, %p835_p1  ;;  %p34_p12 = scmp.ge.s32.totalorder %s32_s5, 2 }
  0x12   : > { %p46_p13 = scmp.ne.s32.totalorder %s760_s14, %s756_s13  ;;  %p47_p0 = scmp.eq.s32.totalorder %s772_s17, 0 }
  0x13   : > { %557 = dma.hbm_to_vmem [thread:$0]  (!%p555_p10), %s157_s26, 4096, %s159_s29, [#allocation6], %s775_s30, %s775_s30, %s776_s4  }
  0x14   : > { %s978_s5 = smov (%p34_p12, %s32_s5), 0  ;;  %p48_p3 = por %p47_p0, %p46_p13 }
  0x15   : > { %p876_p5 = por %p839_p2, %p46_p13  ;;  %s36_s8 = ssub.s32 %s768_s16, %s978_s5 }
  0x16   : > { %p567_p7 = scmp.lt.s32.totalorder %s772_s17, 2  ;;  %p37_p9 = scmp.eq.s32.totalorder %s36_s8, 0 }
  0x17   : > { %s178_s9 = sand.u32 1, %s760_s14   ;;  %s510_s18 = smul.u32 96, %s768_s16 }
  0x18   : > { %s543_s10 = smul.u32 96, %s178_s9  ;;  %p559_p10 = pnand %p567_p7, %p48_p3 }
  0x19   : > { %s885_s11 = scalar_select %p37_p9, %s760_s14, %s39_s6  }
  0x1a   : > { %s182_s19 = scalar_lea.vmem [#allocation2], %s543_s10  ;;  %s188_s28 = scalar_lea.hbm %s962_s0, %s510_s18 }
  0x1b   : > { %s191_s24 = sshll.u32 %s182_s19, 4  ;;  %s189_s21 = sshll.u32 %s188_s28, 4  ;;  %s192_s24 = int_to_ptr.vmem [resolvable:$true] %s191_s24  ;;  %s190_s21 = int_to_ptr.hbm [resolvable:$true] %s189_s21 }
  0x1c   : > { %s179_s29 = scalar_lea.sflag [#allocation3], %s178_s9  ;;  %s777_s30 = smov 256  }
  0x1d   : > { %s778_s4 = smov 16   ;;  %203 = sbr.rel (%p858_p8) target bundleno = 226 (0xe2), region = 32 }
  0x1e   : > { %561 = dma.hbm_to_vmem [thread:$0]  (!%p559_p10), %s190_s21, 1536, %s192_s24, %s179_s29, %s777_s30, %s777_s30, %s778_s4  }
  0x1f   : > { %s894_s6 = sand.u32 (!%p858_p8), 1, %s756_s13  }
  0x20   : > { %s544_s8 = smul.u32 (!%p858_p8), 96, %s894_s6  ;;  %s206_s10 = scalar_lea.sflag (!%p858_p8), [#allocation3], %s894_s6 }
  0x22   : > { %s898_s19 = scalar_lea.vmem [#allocation2], %s544_s8 }
  0x23   : > { %739 = dma.done.wait (%p845_p4), %s206_s10, 1536  }
  0x24   : > { %741 = vsyncadd (%p845_p4), %s206_s10, 4294965760 }
  0x25   : > { %743 = dma.done.wait (%p835_p1), [#allocation6], 4096  }
  0x26   : > { %745 = vsyncadd (%p835_p1), [#allocation6], 4294963200  ;;  %v273_v0 = vld [vmem:[#allocation5 + $0x78] sm:$0xff]  ;;  %v272_v1 = vld [vmem:[#allocation5 + $0x70] sm:$0xff]  ;;  %s545_s27 = smul.u32 48, %s894_s6  ;;  %s706_s10 = scalar_lea.hbm %s965_s3, 96 }
  0x27   : > { %v289_v2 = vld [vmem:[#allocation5 + $0xf8] sm:$0xff]  ;;  %511 = vmatpush.msra.mxu2 %v273_v0  ;;  %v288_v3 = vld [vmem:[#allocation5 + $0xf0] sm:$0xff]  ;;  %v271_v4 = vld [vmem:[#allocation5 + $0x68] sm:$0xff]  ;;  %294 = vmatpush.msra.mxu0 %v273_v0  ;;  %s509_s18 = smul.u32 48, %s764_s15  ;;  %s371_s15 = scalar_lea.sflag [#allocation4], %s894_s6 }
  0x28   : > { %527 = vmatpush.msra.mxu3 %v289_v2  ;;  %v287_v5 = vld [vmem:[#allocation5 + $0xe8] sm:$0xff]  ;;  %329 = vmatpush.msra.mxu1 %v289_v2  ;;  %v270_v6 = vld [vmem:[#allocation5 + $0x60] sm:$0xff]  ;;  %v269_v8 = vld [vmem:[#allocation5 + $0x58] sm:$0xff]  ;;  %s240_s9 = scalar_lea.vmem [#allocation7], %s545_s27 }
  0x29   : > { %512 = vmatpush.msra.mxu2 %v272_v1  ;;  %295 = vmatpush.msra.mxu0 %v272_v1  ;;  %v286_v7 = vld [vmem:[#allocation5 + $0xe0] sm:$0xff]  ;;  %v285_v9 = vld [vmem:[#allocation5 + $0xd8] sm:$0xff]  ;;  %v268_v10 = vld [vmem:[#allocation5 + $0x50] sm:$0xff]  ;;  %s383_s26 = scalar_lea.hbm %s965_s3, %s509_s18  ;;  %s384_s28 = sshll.u32 %s240_s9, 4  ;;  %s385_s28 = int_to_ptr.vmem [resolvable:$true] %s384_s28 }
  0x2a   : > { %528 = vmatpush.msra.mxu3 %v288_v3  ;;  %330 = vmatpush.msra.mxu1 %v288_v3  ;;  %v284_v11 = vld [vmem:[#allocation5 + $0xd0] sm:$0xff]  ;;  %v267_v12 = vld [vmem:[#allocation5 + $0x48] sm:$0xff]  ;;  %v266_v14 = vld [vmem:[#allocation5 + $0x40] sm:$0xff]  ;;  %s386_s21 = sshll.u32 %s383_s26, 4  ;;  %s387_s21 = int_to_ptr.hbm [resolvable:$true] %s386_s21 }
  0x2b   : > { %513 = vmatpush.msra.mxu2 %v271_v4  ;;  %296 = vmatpush.msra.mxu0 %v271_v4  ;;  %v283_v13 = vld [vmem:[#allocation5 + $0xc8] sm:$0xff]  ;;  %v282_v15 = vld [vmem:[#allocation5 + $0xc0] sm:$0xff]  ;;  %v265_v16 = vld [vmem:[#allocation5 + $0x38] sm:$0xff]  ;;  %s700_s29 = sshra.s32 %s387_s21, 4  ;;  %s701_s29 = int_to_ptr.hbm [resolvable:$true] %s700_s29 }
  0x2c   : > { %529 = vmatpush.msra.mxu3 %v287_v5  ;;  %331 = vmatpush.msra.mxu1 %v287_v5  ;;  %v281_v17 = vld [vmem:[#allocation5 + $0xb8] sm:$0xff]  ;;  %v264_v18 = vld [vmem:[#allocation5 + $0x30] sm:$0xff]  ;;  %v263_v20 = vld [vmem:[#allocation5 + $0x28] sm:$0xff]  ;;  %s702_s30 = scalar_lea.hbm %s701_s29, 48  ;;  %p707_p8 = scmp.lt.s32.totalorder %s701_s29, %s965_s3 }
  0x2d   : > { %514 = vmatpush.msra.mxu2 %v270_v6  ;;  %297 = vmatpush.msra.mxu0 %v270_v6  ;;  %v280_v19 = vld [vmem:[#allocation5 + $0xb0] sm:$0xff]  ;;  %v279_v21 = vld [vmem:[#allocation5 + $0xa8] sm:$0xff]  ;;  %v262_v22 = vld [vmem:[#allocation5 + $0x20] sm:$0xff]  ;;  %p703_p1 = scmp.ne.s32.totalorder %s701_s29, %s702_s30  ;;  %p708_p12 = scmp.lt.s32.totalorder %s706_s10, %s702_s30 }
  0x2e   : > { %530 = vmatpush.msra.mxu3 %v286_v7  ;;  %332 = vmatpush.msra.mxu1 %v286_v7  ;;  %v278_v23 = vld [vmem:[#allocation5 + $0xa0] sm:$0xff]  ;;  %v261_v24 = vld [vmem:[#allocation5 + $0x18] sm:$0xff]  ;;  %v260_v26 = vld [vmem:[#allocation5 + $0x10] sm:$0xff] }
  0x2f   : > { %515 = vmatpush.msra.mxu2 %v269_v8  ;;  %298 = vmatpush.msra.mxu0 %v269_v8  ;;  %v277_v25 = vld [vmem:[#allocation5 + $0x98] sm:$0xff]  ;;  %v276_v27 = vld [vmem:[#allocation5 + $0x90] sm:$0xff]  ;;  %v259_v28 = vld [vmem:[#allocation5 + $0x8] sm:$0xff]  ;;  %p704_p2 = pnand %p703_p1, %p876_p5  ;;  %p709_p13 = por %p708_p12, %p707_p8 }
  0x30   : > { %531 = vmatpush.msra.mxu3 %v285_v9  ;;  %333 = vmatpush.msra.mxu1 %v285_v9  ;;  %v275_v29 = vld [vmem:[#allocation5 + $0x88] sm:$0xff]  ;;  %v258_v30 = vld [vmem:[#allocation5] sm:$0xff]  ;;  %v252_v32 = vld [vmem:[%s898_s19 + $0x30] sm:$0xff] }
  0x31   : > { %516 = vmatpush.msra.mxu2 %v268_v10  ;;  %299 = vmatpush.msra.mxu0 %v268_v10  ;;  %v274_v31 = vld [vmem:[#allocation5 + $0x80] sm:$0xff]  ;;  %v253_v33 = vld [vmem:[%s898_s19 + $0x38] sm:$0xff]  ;;  %v247_v35 = vld [vmem:[%s898_s19 + $0x8] sm:$0xff]  ;;  %p705_p4 = pneg %p704_p2 }
  0x32   : > { %532 = vmatpush.msra.mxu3 %v284_v11  ;;  %334 = vmatpush.msra.mxu1 %v284_v11  ;;  %v246_v34 = vld [vmem:[%s898_s19] sm:$0xff]  ;;  %v255_v37 = vld [vmem:[%s898_s19 + $0x48] sm:$0xff]  ;;  %v248_v38 = vld [vmem:[%s898_s19 + $0x10] sm:$0xff] }
  0x33   : > { %517 = vmatpush.msra.mxu2 %v267_v12  ;;  %300 = vmatpush.msra.mxu0 %v267_v12  ;;  %v254_v36 = vld [vmem:[%s898_s19 + $0x40] sm:$0xff]  ;;  %v249_v39 = vld [vmem:[%s898_s19 + $0x18] sm:$0xff]  ;;  %v256_v40 = vld [vmem:[%s898_s19 + $0x50] sm:$0xff]  ;;  %p710_p0 = pnand %p709_p13, %p705_p4 }
  0x34   : > { %533 = vmatpush.msra.mxu3 %v283_v13  ;;  %335 = vmatpush.msra.mxu1 %v283_v13  ;;  %v257_v41 = vld [vmem:[%s898_s19 + $0x58] sm:$0xff]  ;;  %v250_v42 = vld [vmem:[%s898_s19 + $0x20] sm:$0xff]  ;;  %v251_v43 = vld [vmem:[%s898_s19 + $0x28] sm:$0xff] }
  0x35   : > { %518 = vmatpush.msra.mxu2 %v266_v14  ;;  %301 = vmatpush.msra.mxu0 %v266_v14  ;;  %v625_v44 = vld [vmem:[%s964_s2] ss:$0 sm:$0xff] }
  0x36   : > { %534 = vmatpush.msra.mxu3 %v282_v15  ;;  %336 = vmatpush.msra.mxu1 %v282_v15 }
  0x37   : > { %519 = vmatpush.msra.mxu2 %v265_v16  ;;  %302 = vmatpush.msra.mxu0 %v265_v16 }
  0x38   : > { %535 = vmatpush.msra.mxu3 %v281_v17  ;;  %337 = vmatpush.msra.mxu1 %v281_v17 }
  0x39   : > { %520 = vmatpush.msra.mxu2 %v264_v18  ;;  %303 = vmatpush.msra.mxu0 %v264_v18 }
  0x3a   : > { %536 = vmatpush.msra.mxu3 %v280_v19  ;;  %338 = vmatpush.msra.mxu1 %v280_v19 }
  0x3b   : > { %521 = vmatpush.msra.mxu2 %v263_v20  ;;  %304 = vmatpush.msra.mxu0 %v263_v20 }
  0x3c   : > { %537 = vmatpush.msra.mxu3 %v279_v21  ;;  %339 = vmatpush.msra.mxu1 %v279_v21 }
  0x3d   : > { %522 = vmatpush.msra.mxu2 %v262_v22  ;;  %305 = vmatpush.msra.mxu0 %v262_v22 }
  0x3e   : > { %538 = vmatpush.msra.mxu3 %v278_v23  ;;  %340 = vmatpush.msra.mxu1 %v278_v23 }
  0x3f   : > { %523 = vmatpush.msra.mxu2 %v261_v24  ;;  %306 = vmatpush.msra.mxu0 %v261_v24 }
  0x40   : > { %539 = vmatpush.msra.mxu3 %v277_v25  ;;  %341 = vmatpush.msra.mxu1 %v277_v25 }
  0x41   : > { %524 = vmatpush.msra.mxu2 %v260_v26  ;;  %307 = vmatpush.msra.mxu0 %v260_v26 }
  0x42   : > { %540 = vmatpush.msra.mxu3 %v276_v27  ;;  %342 = vmatpush.msra.mxu1 %v276_v27 }
  0x43   : > { %525 = vmatpush.msra.mxu2 %v259_v28  ;;  %308 = vmatpush.msra.mxu0 %v259_v28 }
  0x44   : > { %541 = vmatpush.msra.mxu3 %v275_v29  ;;  %343 = vmatpush.msra.mxu1 %v275_v29 }
  0x45   : > { %526 = vmatpush.msra.mxu2 %v258_v30  ;;  %309 = vmatpush.msra.mxu0 %v258_v30 }
  0x46   : > { %542 = vmatpush.msra.mxu3 %v274_v31  ;;  %319 = vmatmul.f32.vlgmr.msra.gmra.mxu2 %v252_v32 }
  0x47   : > { %354 = vmatmul.f32.vlgmr.msra.gmra.mxu3 %v253_v33  ;;  %344 = vmatpush.msra.mxu1 %v274_v31 }
  0x48   : > { %310 = vmatmul.f32.vlgmr.msra.gmra.mxu0 %v246_v34  ;;  %345 = vmatmul.f32.vlgmr.msra.gmra.mxu1 %v247_v35 }
  0x4e   : > { %322 = vmatmul.f32.gmra.mxu2 %v254_v36 }
  0x4f   : > { %357 = vmatmul.f32.gmra.mxu3 %v255_v37 }
  0x50   : > { %313 = vmatmul.f32.gmra.mxu0 %v248_v38  ;;  %348 = vmatmul.f32.gmra.mxu1 %v249_v39 }
  0x56   : > { %325 = vmatmul.f32.gmra.mxu2 %v256_v40 }
  0x57   : > { %360 = vmatmul.f32.gmra.mxu3 %v257_v41 }
  0x58   : > { %316 = vmatmul.f32.gmra.mxu0 %v250_v42  ;;  %351 = vmatmul.f32.gmra.mxu1 %v251_v43 }
  0xc5   : > { %v311_v45 = vpop.f32.mrf.mxu0  ;;  %v346_v46 = vpop.f32.mrf.mxu1 }
  0xc6   : > { %v312_v47 = vadd.f32 %v625_v44, %v311_v45 }
  0xc8   : > { %v347_v48 = vadd.f32 %v346_v46, %v312_v47 }
  0xc9   : > { %v320_v49 = vpop.f32.mrf.mxu2 }
  0xca   : > { %v355_v50 = vpop.f32.mrf.mxu3  ;;  %v321_v51 = vadd.f32 %v625_v44, %v320_v49  ;;  %364 = vst [vmem:[%s240_s9] sm:$0xff] %v347_v48 }
  0xcc   : > { %v356_v52 = vadd.f32 %v355_v50, %v321_v51 }
  0xcd   : > { %v314_v53 = vpop.f32.mrf.mxu0  ;;  %v349_v54 = vpop.f32.mrf.mxu1 }
  0xce   : > { %367 = vst [vmem:[%s240_s9 + $0x18] sm:$0xff] %v356_v52  ;;  %v315_v55 = vadd.f32 %v625_v44, %v314_v53 }
  0xd0   : > { %v350_v56 = vadd.f32 %v349_v54, %v315_v55 }
  0xd1   : > { %v323_v57 = vpop.f32.mrf.mxu2 }
  0xd2   : > { %v358_v58 = vpop.f32.mrf.mxu3  ;;  %v324_v59 = vadd.f32 %v625_v44, %v323_v57  ;;  %365 = vst [vmem:[%s240_s9 + $0x8] sm:$0xff] %v350_v56 }
  0xd4   : > { %v359_v60 = vadd.f32 %v358_v58, %v324_v59 }
  0xd5   : > { %v317_v61 = vpop.f32.mrf.mxu0  ;;  %v352_v62 = vpop.f32.mrf.mxu1 }
  0xd6   : > { %368 = vst [vmem:[%s240_s9 + $0x20] sm:$0xff] %v359_v60  ;;  %v318_v63 = vadd.f32 %v625_v44, %v317_v61 }
  0xd8   : > { %v353_v0 = vadd.f32 %v352_v62, %v318_v63 }
  0xd9   : > { %v326_v1 = vpop.f32.mrf.mxu2 }
  0xda   : > { %v361_v2 = vpop.f32.mrf.mxu3  ;;  %v327_v3 = vadd.f32 %v625_v44, %v326_v1  ;;  %366 = vst [vmem:[%s240_s9 + $0x10] sm:$0xff] %v353_v0 }
  0xdc   : > { %v362_v4 = vadd.f32 %v361_v2, %v327_v3 }
  0xde   : > { %369 = vst [vmem:[%s240_s9 + $0x28] sm:$0xff] %v362_v4 }
  0xdf   : > { %713 = shalt.err (!%p710_p0)
}
  0xe0   : > { %s779_s6 = smov 128   ;;  %s780_s22 = smov 8  }
  0xe1   : > { %552 = dma.vmem_to_hbm [thread:$0]  (%p876_p5), %s385_s28, 768, %s387_s21, %s371_s15, %s779_s6, %s779_s6, %s780_s22  }
  0xe2 PF: > { %s401_s27 = sand.u32 1, %s752_s12   ;;  %p563_p3 = pnand %p499_p11, %p850_p6 }
  0xe3   : > { %s402_s9 = scalar_lea.sflag [#allocation4], %s401_s27 }
  0xe4   : > { %p564_p7 = pneg %p563_p3 }
  0xe6   : > { %747 = dma.done.wait (%p564_p7), %s402_s9, 768  }
  0xe7   : > { %749 = vsyncadd (%p564_p7), %s402_s9, 4294966528  ;;  %s20_s17 = sadd.s32 1, %s772_s17   ;;  %s972_s12 = smov %s756_s13 }
  0xe8   : > { %p17_p9 = scmp.ge.s32.totalorder %s20_s17, 4   ;;  %s973_s13 = smov %s760_s14 }
  0xe9   : > { %s974_s14 = smov %s885_s11  ;;  %s975_s15 = smov %s768_s16 }
  0xea   : > { %s976_s16 = smov %s978_s5  ;;  %19 = sbr.rel (!%p17_p9) target bundleno = 7 (0x7), region = 85 }
  0xef   :  { %408 = vsyncpa [#allocation3], 1 }
  0xf0   :  { %410 = vsyncpa [#allocation3 + $0x1], 1 }
  0xf1   :  { %411 = vsyncpa [#allocation6], 1 }
  0xf2   :  { %412 = vsyncpa [#allocation4], 1 }
  0xf3   :  { %414 = vsyncpa [#allocation4 + $0x1], 1 }

</bundles_post_ra>
